<compile_context>
chip_gen: v6e
topology: v6e:2x2x1
jax: 0.10.0
libtpu: 0.0.40
codegen_flags: <defaults>
</compile_context>

<pallas_src>
import functools

import jax
import jax.numpy as jnp
from jax.experimental import pallas as pl
from jax.experimental.pallas import tpu as pltpu


def vae_kernel(x_ref, eps_ref,
               we_ref, be_ref,
               whead_ref, bhead_ref,
               wd1_ref, bd1_ref,
               wd2_ref, bd2_ref,
               slab_ref,
               *, latent):
    x = x_ref[...]

    # ---- encoder: hidden = ReLU(x @ We + be) ----
    h = jnp.dot(x, we_ref[...], preferred_element_type=jnp.float32) + be_ref[...]
    h = jnp.maximum(h, 0.0)

    # ---- fused heads: one matmul -> [mu | log_sigma], split statically ----
    heads = (jnp.dot(h, whead_ref[...], preferred_element_type=jnp.float32)
             + bhead_ref[...])
    mu = heads[:, :latent]
    log_sigma = heads[:, latent:]
    sigma = jnp.exp(log_sigma)

    # ---- reparameterization: z = mu + sigma * eps ----
    z = mu + sigma * eps_ref[...]

    # ---- decoder: ReLU(z @ Wd1 + bd1) -> sigmoid(. @ Wd2 + bd2) ----
    d = jnp.dot(z, wd1_ref[...], preferred_element_type=jnp.float32) + bd1_ref[...]
    d = jnp.maximum(d, 0.0)
    logits = jnp.dot(d, wd2_ref[...], preferred_element_type=jnp.float32) + bd2_ref[...]
    recon = jax.nn.sigmoid(logits)

    # ---- single lane-dense store: [recon | mu | sigma] along the lane dim ----
    slab_ref[...] = jnp.concatenate([recon, mu, sigma], axis=-1)


def vae_forward(state, eps, params, *, tb=128):
    """Full VAE forward in one fused, batch-tiled Pallas kernel.

    Returns (reconstruction, z_mean, z_sigma) — matching the PyTorch module's
    decoder output and its self.z_mean / self.z_sigma attributes.
    """
    B, D_in = state.shape
    H = params["we"].shape[1]
    Z = params["wmu"].shape[1]
    D_out = params["wd2"].shape[1]

    tb = min(tb, B)
    assert B % tb == 0, "batch must be divisible by the batch tile"
    assert tb % 8 == 0, "batch tile must satisfy the sublane (8) constraint"

    # Fuse the two encoder heads into a single (H, 2Z) weight / (1, 2Z) bias.
    whead = jnp.concatenate([params["wmu"], params["wls"]], axis=1)
    bhead = jnp.concatenate([params["bmu"], params["bls"]], axis=1)

    slab_w = D_out + 2 * Z

    def resident(shape):
        # Same block index every grid step -> DMA'd once, stays in VMEM.
        return pl.BlockSpec(shape, lambda i: tuple(0 for _ in shape))

    kernel = functools.partial(vae_kernel, latent=Z)

    slab = pl.pallas_call(
        kernel,
        out_shape=jax.ShapeDtypeStruct((B, slab_w), jnp.float32),
        grid_spec=pltpu.PrefetchScalarGridSpec(
            num_scalar_prefetch=0,
            grid=(B // tb,),
            in_specs=[
                pl.BlockSpec((tb, D_in), lambda i: (i, 0)),   # state tile
                pl.BlockSpec((tb, Z), lambda i: (i, 0)),      # eps tile
                resident(params["we"].shape),
                resident(params["be"].shape),
                resident(whead.shape),
                resident(bhead.shape),
                resident(params["wd1"].shape),
                resident(params["bd1"].shape),
                resident(params["wd2"].shape),
                resident(params["bd2"].shape),
            ],
            out_specs=pl.BlockSpec((tb, slab_w), lambda i: (i, 0)),
        ),
        compiler_params=pltpu.CompilerParams(
            dimension_semantics=("parallel",)),
    )(state, eps,
      params["we"], params["be"],
      whead, bhead,
      params["wd1"], params["bd1"],
      params["wd2"], params["bd2"])

    recon = slab[:, :D_out]
    z_mean = slab[:, D_out:D_out + Z]
    z_sigma = slab[:, D_out + Z:]
    return recon, z_mean, z_sigma


def init_params(key, d_in, hidden, latent, d_out):
    """Deterministic PyTorch-Linear-style init: U(-1/sqrt(fan_in), 1/sqrt(fan_in))."""
    ks = jax.random.split(key, 10)

    def lin(kw, kb, fan_in, fan_out):
        bound = 1.0 / jnp.sqrt(fan_in)
        w = jax.random.uniform(kw, (fan_in, fan_out), jnp.float32, -bound, bound)
        b = jax.random.uniform(kb, (1, fan_out), jnp.float32, -bound, bound)
        return w, b

    we, be = lin(ks[0], ks[1], d_in, hidden)
    wmu, bmu = lin(ks[2], ks[3], hidden, latent)
    wls, bls = lin(ks[4], ks[5], hidden, latent)
    wd1, bd1 = lin(ks[6], ks[7], latent, hidden)
    wd2, bd2 = lin(ks[8], ks[9], hidden, d_out)
    return dict(we=we, be=be, wmu=wmu, bmu=bmu, wls=wls, bls=bls,
                wd1=wd1, bd1=bd1, wd2=wd2, bd2=bd2)


if __name__ == "__main__":
    key = jax.random.PRNGKey(0)
    k_x, k_eps, k_p = jax.random.split(key, 3)

    # Batch large enough to exercise the batch-tiled grid (2 tiles of 128),
    # feature dims match the toy MLP VAE.
    B, D_in, H, Z = 256, 32, 64, 16
    D_out = D_in  # autoencoder reconstructs the input space
    TB = 128

    state = jax.random.normal(k_x, (B, D_in), jnp.float32)
    # TODO(synk): the PyTorch module draws eps via np.random inside forward;
    # here eps is a deterministic jax.random input (in-kernel pltpu PRNG is an
    # optional further optimization).
    eps = jax.random.normal(k_eps, (B, Z), jnp.float32)

    params = init_params(k_p, D_in, H, Z, D_out)

    recon, z_mean, z_sigma = vae_forward(state, eps, params, tb=TB)
    jax.block_until_ready((recon, z_mean, z_sigma))

    # sanity: shapes/dtypes/semantics match the module
    assert recon.shape == (B, D_out) and recon.dtype == jnp.float32
    assert z_mean.shape == (B, Z) and z_sigma.shape == (B, Z)
    assert bool(jnp.all(z_sigma > 0.0))
    assert bool(jnp.all((recon >= 0.0) & (recon <= 1.0)))

    print("KERNEL_OK")
</pallas_src>

<mosaic_0001>
module attributes {stable_mosaic.version = 11 : i64} {
  func.func @vae_kernel(%arg0: i32, %arg1: memref<128x32xf32, #tpu.memory_space<vmem>>, %arg2: memref<128x16xf32, #tpu.memory_space<vmem>>, %arg3: memref<32x64xf32, #tpu.memory_space<vmem>>, %arg4: memref<1x64xf32, #tpu.memory_space<vmem>>, %arg5: memref<64x32xf32, #tpu.memory_space<vmem>>, %arg6: memref<1x32xf32, #tpu.memory_space<vmem>>, %arg7: memref<16x64xf32, #tpu.memory_space<vmem>>, %arg8: memref<1x64xf32, #tpu.memory_space<vmem>>, %arg9: memref<64x32xf32, #tpu.memory_space<vmem>>, %arg10: memref<1x32xf32, #tpu.memory_space<vmem>>, %arg11: memref<128x64xf32, #tpu.memory_space<vmem>>) attributes {dimension_semantics = [#tpu.dimension_semantics<parallel>], iteration_bounds = array<i64: 2>, scalar_prefetch = 0 : i64, scratch_operands = 0 : i64, tpu.core_type = #tpu.core_type<tc>, window_params = [{transform_indices = @transform_0, window_bounds = array<i64: 128, 32>}, {transform_indices = @transform_1, window_bounds = array<i64: 128, 16>}, {pipeline_mode = #tpu.pipeline_mode<synchronous>, transform_indices = @transform_2, window_bounds = array<i64: 32, 64>}, {pipeline_mode = #tpu.pipeline_mode<synchronous>, transform_indices = @transform_3, window_bounds = array<i64: 1, 64>}, {pipeline_mode = #tpu.pipeline_mode<synchronous>, transform_indices = @transform_4, window_bounds = array<i64: 64, 32>}, {pipeline_mode = #tpu.pipeline_mode<synchronous>, transform_indices = @transform_5, window_bounds = array<i64: 1, 32>}, {pipeline_mode = #tpu.pipeline_mode<synchronous>, transform_indices = @transform_6, window_bounds = array<i64: 16, 64>}, {pipeline_mode = #tpu.pipeline_mode<synchronous>, transform_indices = @transform_7, window_bounds = array<i64: 1, 64>}, {pipeline_mode = #tpu.pipeline_mode<synchronous>, transform_indices = @transform_8, window_bounds = array<i64: 64, 32>}, {pipeline_mode = #tpu.pipeline_mode<synchronous>, transform_indices = @transform_9, window_bounds = array<i64: 1, 32>}, {transform_indices = @transform_10, window_bounds = array<i64: 128, 64>}]} {
    %c0 = arith.constant 0 : index
    %c0_0 = arith.constant 0 : index
    %0 = vector.load %arg1[%c0, %c0_0] : memref<128x32xf32, #tpu.memory_space<vmem>>, vector<128x32xf32>
    %c0_1 = arith.constant 0 : index
    %c0_2 = arith.constant 0 : index
    %1 = vector.load %arg3[%c0_1, %c0_2] : memref<32x64xf32, #tpu.memory_space<vmem>>, vector<32x64xf32>
    %cst = arith.constant dense<0.000000e+00> : vector<128x64xf32>
    %2 = tpu.matmul %0, %1, %cst {dimension_numbers = #tpu.dot_dimension_numbers<[1], [0], [0], [1], [0, 0, 1, 1], [], []>} : vector<128x32xf32>, vector<32x64xf32>, vector<128x64xf32> -> vector<128x64xf32>
    %c0_3 = arith.constant 0 : index
    %c0_4 = arith.constant 0 : index
    %3 = vector.load %arg4[%c0_3, %c0_4] : memref<1x64xf32, #tpu.memory_space<vmem>>, vector<1x64xf32>
    %4 = vector.broadcast %3 : vector<1x64xf32> to vector<128x64xf32>
    %5 = arith.addf %2, %4 : vector<128x64xf32>
    %cst_5 = arith.constant 0.000000e+00 : f32
    %6 = vector.broadcast %cst_5 : f32 to vector<128x64xf32>
    %7 = arith.maximumf %5, %6 : vector<128x64xf32>
    %c0_6 = arith.constant 0 : index
    %c0_7 = arith.constant 0 : index
    %8 = vector.load %arg5[%c0_6, %c0_7] : memref<64x32xf32, #tpu.memory_space<vmem>>, vector<64x32xf32>
    %cst_8 = arith.constant dense<0.000000e+00> : vector<128x32xf32>
    %9 = tpu.matmul %7, %8, %cst_8 {dimension_numbers = #tpu.dot_dimension_numbers<[1], [0], [0], [1], [0, 0, 1, 1], [], []>} : vector<128x64xf32>, vector<64x32xf32>, vector<128x32xf32> -> vector<128x32xf32>
    %c0_9 = arith.constant 0 : index
    %c0_10 = arith.constant 0 : index
    %10 = vector.load %arg6[%c0_9, %c0_10] : memref<1x32xf32, #tpu.memory_space<vmem>>, vector<1x32xf32>
    %11 = vector.broadcast %10 : vector<1x32xf32> to vector<128x32xf32>
    %12 = arith.addf %9, %11 : vector<128x32xf32>
    %13 = vector.extract_strided_slice %12 {offsets = [0, 0], sizes = [128, 16], strides = [1, 1]} : vector<128x32xf32> to vector<128x16xf32>
    %14 = vector.extract_strided_slice %12 {offsets = [0, 16], sizes = [128, 16], strides = [1, 1]} : vector<128x32xf32> to vector<128x16xf32>
    %15 = math.exp %14 : vector<128x16xf32>
    %c0_11 = arith.constant 0 : index
    %c0_12 = arith.constant 0 : index
    %16 = vector.load %arg2[%c0_11, %c0_12] : memref<128x16xf32, #tpu.memory_space<vmem>>, vector<128x16xf32>
    %17 = arith.mulf %15, %16 : vector<128x16xf32>
    %18 = arith.addf %13, %17 : vector<128x16xf32>
    %c0_13 = arith.constant 0 : index
    %c0_14 = arith.constant 0 : index
    %19 = vector.load %arg7[%c0_13, %c0_14] : memref<16x64xf32, #tpu.memory_space<vmem>>, vector<16x64xf32>
    %cst_15 = arith.constant dense<0.000000e+00> : vector<128x64xf32>
    %20 = tpu.matmul %18, %19, %cst_15 {dimension_numbers = #tpu.dot_dimension_numbers<[1], [0], [0], [1], [0, 0, 1, 1], [], []>} : vector<128x16xf32>, vector<16x64xf32>, vector<128x64xf32> -> vector<128x64xf32>
    %c0_16 = arith.constant 0 : index
    %c0_17 = arith.constant 0 : index
    %21 = vector.load %arg8[%c0_16, %c0_17] : memref<1x64xf32, #tpu.memory_space<vmem>>, vector<1x64xf32>
    %22 = vector.broadcast %21 : vector<1x64xf32> to vector<128x64xf32>
    %23 = arith.addf %20, %22 : vector<128x64xf32>
    %cst_18 = arith.constant 0.000000e+00 : f32
    %24 = vector.broadcast %cst_18 : f32 to vector<128x64xf32>
    %25 = arith.maximumf %23, %24 : vector<128x64xf32>
    %c0_19 = arith.constant 0 : index
    %c0_20 = arith.constant 0 : index
    %26 = vector.load %arg9[%c0_19, %c0_20] : memref<64x32xf32, #tpu.memory_space<vmem>>, vector<64x32xf32>
    %cst_21 = arith.constant dense<0.000000e+00> : vector<128x32xf32>
    %27 = tpu.matmul %25, %26, %cst_21 {dimension_numbers = #tpu.dot_dimension_numbers<[1], [0], [0], [1], [0, 0, 1, 1], [], []>} : vector<128x64xf32>, vector<64x32xf32>, vector<128x32xf32> -> vector<128x32xf32>
    %c0_22 = arith.constant 0 : index
    %c0_23 = arith.constant 0 : index
    %28 = vector.load %arg10[%c0_22, %c0_23] : memref<1x32xf32, #tpu.memory_space<vmem>>, vector<1x32xf32>
    %29 = vector.broadcast %28 : vector<1x32xf32> to vector<128x32xf32>
    %30 = arith.addf %27, %29 : vector<128x32xf32>
    %31 = arith.negf %30 : vector<128x32xf32>
    %32 = math.exp %31 : vector<128x32xf32>
    %cst_24 = arith.constant 1.000000e+00 : f32
    %33 = vector.broadcast %cst_24 : f32 to vector<128x32xf32>
    %34 = arith.addf %33, %32 : vector<128x32xf32>
    %35 = arith.divf %33, %34 : vector<128x32xf32>
    %36 = tpu.concatenate %35, %13, %15 in 1 : vector<128x32xf32>, vector<128x16xf32>, vector<128x16xf32> -> vector<128x64xf32>
    %c0_25 = arith.constant 0 : index
    %c0_26 = arith.constant 0 : index
    %37 = vector.load %arg11[%c0_25, %c0_26] : memref<128x64xf32, #tpu.memory_space<vmem>>, vector<128x64xf32>
    tpu.vector_store %arg11[%c0_25, %c0_26], %36 {strides = array<i32>} : memref<128x64xf32, #tpu.memory_space<vmem>>, vector<128x64xf32>,
    return
  }
  func.func @transform_0(%arg0: i32) -> (i32, i32) {
    %c0_i32 = arith.constant 0 : i32
    %c0_i32_0 = arith.constant 0 : i32
    return %arg0, %c0_i32 : i32, i32
  }
  func.func @transform_1(%arg0: i32) -> (i32, i32) {
    %c0_i32 = arith.constant 0 : i32
    %c0_i32_0 = arith.constant 0 : i32
    return %arg0, %c0_i32 : i32, i32
  }
  func.func @transform_2(%arg0: i32) -> (i32, i32) {
    %c0_i32 = arith.constant 0 : i32
    %c0_i32_0 = arith.constant 0 : i32
    %c0_i32_1 = arith.constant 0 : i32
    return %c0_i32, %c0_i32_0 : i32, i32
  }
  func.func @transform_3(%arg0: i32) -> (i32, i32) {
    %c0_i32 = arith.constant 0 : i32
    %c0_i32_0 = arith.constant 0 : i32
    %c0_i32_1 = arith.constant 0 : i32
    return %c0_i32, %c0_i32_0 : i32, i32
  }
  func.func @transform_4(%arg0: i32) -> (i32, i32) {
    %c0_i32 = arith.constant 0 : i32
    %c0_i32_0 = arith.constant 0 : i32
    %c0_i32_1 = arith.constant 0 : i32
    return %c0_i32, %c0_i32_0 : i32, i32
  }
  func.func @transform_5(%arg0: i32) -> (i32, i32) {
    %c0_i32 = arith.constant 0 : i32
    %c0_i32_0 = arith.constant 0 : i32
    %c0_i32_1 = arith.constant 0 : i32
    return %c0_i32, %c0_i32_0 : i32, i32
  }
  func.func @transform_6(%arg0: i32) -> (i32, i32) {
    %c0_i32 = arith.constant 0 : i32
    %c0_i32_0 = arith.constant 0 : i32
    %c0_i32_1 = arith.constant 0 : i32
    return %c0_i32, %c0_i32_0 : i32, i32
  }
  func.func @transform_7(%arg0: i32) -> (i32, i32) {
    %c0_i32 = arith.constant 0 : i32
    %c0_i32_0 = arith.constant 0 : i32
    %c0_i32_1 = arith.constant 0 : i32
    return %c0_i32, %c0_i32_0 : i32, i32
  }
  func.func @transform_8(%arg0: i32) -> (i32, i32) {
    %c0_i32 = arith.constant 0 : i32
    %c0_i32_0 = arith.constant 0 : i32
    %c0_i32_1 = arith.constant 0 : i32
    return %c0_i32, %c0_i32_0 : i32, i32
  }
  func.func @transform_9(%arg0: i32) -> (i32, i32) {
    %c0_i32 = arith.constant 0 : i32
    %c0_i32_0 = arith.constant 0 : i32
    %c0_i32_1 = arith.constant 0 : i32
    return %c0_i32, %c0_i32_0 : i32, i32
  }
  func.func @transform_10(%arg0: i32) -> (i32, i32) {
    %c0_i32 = arith.constant 0 : i32
    %c0_i32_0 = arith.constant 0 : i32
    return %arg0, %c0_i32 : i32, i32
  }
}

</mosaic_0001>

<bundles_post_ra>
// kernel: tpu_custom_call.1
= control target key start
LH: loop header
LB: loop body
LE: loop exit
PB: predicated region body
PF: predicated region fallthrough
CT: control target
= control target key end

     0   :  { %s2319_s13 = smov 0   ;;  %s2831_s0 = inlined_call_operand.vmem [shape: f32[256,32], index: 0, kind: input, shape index: {}]   ;;  %s2832_s1 = inlined_call_operand.vmem [shape: f32[256,16], index: 1, kind: input, shape index: {}]   ;;  %s2833_s2 = inlined_call_operand.vmem [shape: f32[32,64], index: 2, kind: input, shape index: {}]   ;;  %s2834_s3 = inlined_call_operand.vmem [shape: f32[1,64], index: 3, kind: input, shape index: {}]   ;;  %s2835_s4 = inlined_call_operand.vmem [shape: f32[64,32], index: 4, kind: input, shape index: {}]   ;;  %s2836_s5 = inlined_call_operand.vmem [shape: f32[1,32], index: 5, kind: input, shape index: {}]   ;;  %s2837_s6 = inlined_call_operand.vmem [shape: f32[16,64], index: 6, kind: input, shape index: {}]   ;;  %s2838_s7 = inlined_call_operand.vmem [shape: f32[1,64], index: 7, kind: input, shape index: {}]   ;;  %s2839_s8 = inlined_call_operand.vmem [shape: f32[64,32], index: 8, kind: input, shape index: {}]   ;;  %s2840_s9 = inlined_call_operand.vmem [shape: f32[1,32], index: 9, kind: input, shape index: {}]   ;;  %s2841_s10 = inlined_call_operand.vmem [shape: f32[256,64], index: 10, kind: output, shape index: {}]  }
   0x1 LB: > { %s1807_s14 = sadd.s32 4294967295, %s2259_s13   ;;  %p1811_p0 = scmp.ge.s32.totalorder %s2259_s13, 1  ;;  %s2259_s13 = sphi %s2319_s13, %s20_s13  }
   0x2   : > { %p324_p1 = scmp.lt.s32.totalorder %s2259_s13, 3 }
   0x4   : > { %p325_p2 = pnand %p1811_p0, %p324_p1 }
   0x5   : > { %s1812_s19 = sshll.u32 (!%p325_p2), %s1807_s14, 4  ;;  %s2261_s29 = smov (!%p325_p2), 16  }
   0x6   : > { %328 = sbr.rel (%p325_p2) target bundleno = 1014 (0x3f6), region = 60  ;;  %p368_p3 = scmp.lt.s32.totalorder (!%p325_p2), %s1812_s19, 31 }
   0x7   : > { %s2263_s20 = smov (!%p325_p2), 32  }
   0xb   : > { %v404_v0 = vld [vmem:[%s2833_s2 + $0x18] sm:$0xff]  ;;  %v403_v1 = vld [vmem:[%s2833_s2 + $0x10] sm:$0xff]  ;;  %v402_v3 = vld [vmem:[%s2833_s2 + $0x8] sm:$0xff]  ;;  %s2843_s19 = smov (!%p368_p3, %s1812_s19), 31  ;;  %vm412_vm0 = vcmask 261120   ;;  %vm637_vm1 = vcmask 523264  }
   0xc   : > { %1990 = vmatprep.subr.mxu0 %v404_v0  ;;  %v629_v2 = vld [vmem:[%s2835_s4 + $0x38] sm:$0xff]  ;;  %v628_v4 = vld [vmem:[%s2835_s4 + $0x30] sm:$0xff]  ;;  %v401_v5 = vld [vmem:[%s2833_s2] sm:$0xff]  ;;  %s2345_s28 = sshll.u32 %s2843_s19, 3  ;;  %s2262_s19 = smov 112   ;;  %vm1048_vm2 = vcmask 130048  }
   0xd   : > { %1991 = vmatpush3.msra.mxu0 %v404_v0  ;;  %2130 = vmatprep.subr.mxu1 %v629_v2  ;;  %v627_v6 = vld [vmem:[%s2835_s4 + $0x28] sm:$0xff]  ;;  %s2354_s14 = scalar_lea.vmem %s2831_s0, %s2345_s28  ;;  %v626_v11 = vld [vmem:[%s2835_s4 + $0x20] sm:$0xff]  ;;  %v625_v14 = vld [vmem:[%s2835_s4 + $0x18] sm:$0xff]  ;;  %s2407_s27 = scalar_lea.vmem %s2832_s1, %s2345_s28  ;;  %vm1706_vm3 = vcmask 392192  }
   0xe   : > { %1992 = vmatprep.subr.mxu0 %v403_v1  ;;  %2138 = vmatpush3.msra.mxu1 %v629_v2  ;;  %v385_v7 = vld [vmem:[%s2354_s14] sm:$0xff]  ;;  %v386_v8 = vld [vmem:[%s2354_s14 + $0x8] sm:$0xff]  ;;  %v387_v9 = vld [vmem:[%s2354_s14 + $0x10] sm:$0xff]  ;;  %s2746_s25 = scalar_lea.vmem %s2841_s10, %s2345_s28 }
   0xf   : > { %1993 = vmatpush3.msra.mxu0 %v403_v1  ;;  %2131 = vmatprep.subr.mxu1 %v628_v4  ;;  %v388_v10 = vld [vmem:[%s2354_s14 + $0x18] sm:$0xff]  ;;  %v389_v12 = vld [vmem:[%s2354_s14 + $0x20] sm:$0xff]  ;;  %v390_v13 = vld [vmem:[%s2354_s14 + $0x28] sm:$0xff] }
  0x10   : > { %1994 = vmatprep.subr.mxu0 %v402_v3  ;;  %2139 = vmatpush3.msra.mxu1 %v628_v4  ;;  %v391_v15 = vld [vmem:[%s2354_s14 + $0x30] sm:$0xff]  ;;  %v392_v17 = vld [vmem:[%s2354_s14 + $0x38] sm:$0xff]  ;;  %v623_v18 = vld [vmem:[%s2835_s4 + $0x8] sm:$0xff] }
  0x11   : > { %1995 = vmatpush3.msra.mxu0 %v402_v3  ;;  %2132 = vmatprep.subr.mxu1 %v627_v6  ;;  %v624_v16 = vld [vmem:[%s2835_s4 + $0x10] sm:$0xff]  ;;  %v393_v19 = vld [vmem:[%s2354_s14 + $0x40] sm:$0xff]  ;;  %v394_v20 = vld [vmem:[%s2354_s14 + $0x48] sm:$0xff] }
  0x12   : > { %1996 = vmatprep.subr.mxu0 %v401_v5  ;;  %2140 = vmatpush3.msra.mxu1 %v627_v6  ;;  %v395_v21 = vld [vmem:[%s2354_s14 + $0x50] sm:$0xff]  ;;  %v396_v22 = vld [vmem:[%s2354_s14 + $0x58] sm:$0xff]  ;;  %v397_v23 = vld [vmem:[%s2354_s14 + $0x60] sm:$0xff] }
  0x13   : > { %1997 = vmatpush3.msra.mxu0 %v401_v5  ;;  %1998 = vmatprep.mubr.msk.f32.mxu0 %vm412_vm0, %v385_v7  ;;  %v398_v24 = vld [vmem:[%s2354_s14 + $0x68] sm:$0xff]  ;;  %v399_v25 = vld [vmem:[%s2354_s14 + $0x70] sm:$0xff]  ;;  %v400_v26 = vld [vmem:[%s2354_s14 + $0x78] sm:$0xff] }
  0x14   : > { %1999 = vmatmul.mubr.msk.f32.vlgmr.msra.gmra.mxu0 %vm412_vm0, %v386_v8  ;;  %2022 = vmatprep.subr.mxu0 %v629_v2  ;;  %v622_v27 = vld [vmem:[%s2835_s4] sm:$0xff]  ;;  %v865_v29 = vld [vmem:[%s2407_s27 + $0x10] sm:$0xff]  ;;  %v864_v30 = vld [vmem:[%s2407_s27 + $0x8] sm:$0xff] }
  0x15   : > { %2001 = vmatprep.mubr.msk.f32.mxu0 %vm412_vm0, %v387_v9  ;;  %2023 = vmatpush3.msra.mxu0 %v629_v2  ;;  %v863_v28 = vld [vmem:[%s2407_s27] sm:$0xff]  ;;  %v866_v31 = vld [vmem:[%s2407_s27 + $0x18] sm:$0xff]  ;;  %v868_v32 = vld [vmem:[%s2407_s27 + $0x28] sm:$0xff] }
  0x16   : > { %2024 = vmatprep.subr.mxu0 %v628_v4  ;;  %2133 = vmatprep.subr.mxu1 %v626_v11  ;;  %v867_v33 = vld [vmem:[%s2407_s27 + $0x20] sm:$0xff]  ;;  %v870_v34 = vld [vmem:[%s2407_s27 + $0x38] sm:$0xff]  ;;  %v869_v35 = vld [vmem:[%s2407_s27 + $0x30] sm:$0xff] }
  0x17   : > { %2025 = vmatpush3.msra.mxu0 %v628_v4  ;;  %2141 = vmatpush3.msra.mxu1 %v626_v11  ;;  %v872_v36 = vld [vmem:[%s2407_s27 + $0x48] sm:$0xff]  ;;  %v871_v37 = vld [vmem:[%s2407_s27 + $0x40] sm:$0xff]  ;;  %v874_v38 = vld [vmem:[%s2407_s27 + $0x58] sm:$0xff] }
  0x18   : > { %2002 = vmatmul.mubr.msk.f32.gmra.mxu0 %vm412_vm0, %v388_v10  ;;  %2026 = vmatprep.subr.mxu0 %v627_v6  ;;  %v873_v39 = vld [vmem:[%s2407_s27 + $0x50] sm:$0xff]  ;;  %v876_v40 = vld [vmem:[%s2407_s27 + $0x68] sm:$0xff]  ;;  %v875_v41 = vld [vmem:[%s2407_s27 + $0x60] sm:$0xff] }
  0x19   : > { %2004 = vmatprep.mubr.msk.f32.mxu0 %vm412_vm0, %v389_v12  ;;  %2027 = vmatpush3.msra.mxu0 %v627_v6  ;;  %v878_v42 = vld [vmem:[%s2407_s27 + $0x78] sm:$0xff]  ;;  %v877_v43 = vld [vmem:[%s2407_s27 + $0x70] sm:$0xff]  ;;  %v1818_v44 = vld [vmem:[%s2834_s3] ss:$0 sm:$0xff] }
  0x1a   : > { %2028 = vmatprep.subr.mxu0 %v626_v11  ;;  %2134 = vmatprep.subr.mxu1 %v625_v14 }
  0x1b   : > { %2029 = vmatpush3.msra.mxu0 %v626_v11  ;;  %2142 = vmatpush3.msra.mxu1 %v625_v14 }
  0x1c   : > { %2005 = vmatmul.mubr.msk.f32.gmra.mxu0 %vm412_vm0, %v390_v13  ;;  %2030 = vmatprep.subr.mxu0 %v625_v14 }
  0x1d   : > { %2007 = vmatprep.mubr.msk.f32.mxu0 %vm412_vm0, %v391_v15  ;;  %2031 = vmatpush3.msra.mxu0 %v625_v14 }
  0x1e   : > { %2032 = vmatprep.subr.mxu0 %v624_v16  ;;  %2135 = vmatprep.subr.mxu1 %v624_v16 }
  0x1f   : > { %2033 = vmatpush3.msra.mxu0 %v624_v16  ;;  %2143 = vmatpush3.msra.mxu1 %v624_v16 }
  0x20   : > { %2008 = vmatmul.mubr.msk.f32.gmra.mxu0 %vm412_vm0, %v392_v17  ;;  %2034 = vmatprep.subr.mxu0 %v623_v18 }
  0x21   : > { %2010 = vmatprep.mubr.msk.f32.mxu0 %vm412_vm0, %v393_v19  ;;  %2035 = vmatpush3.msra.mxu0 %v623_v18 }
  0x22   : > { %2136 = vmatprep.subr.mxu1 %v623_v18  ;;  %2036 = vmatprep.subr.mxu0 %v622_v27 }
  0x23   : > { %2144 = vmatpush3.msra.mxu1 %v623_v18  ;;  %2037 = vmatpush3.msra.mxu0 %v622_v27 }
  0x24   : > { %2011 = vmatmul.mubr.msk.f32.gmra.mxu0 %vm412_vm0, %v394_v20  ;;  %2137 = vmatprep.subr.mxu1 %v622_v27 }
  0x25   : > { %2013 = vmatprep.mubr.msk.f32.mxu0 %vm412_vm0, %v395_v21  ;;  %2145 = vmatpush3.msra.mxu1 %v622_v27 }
  0x26   : > { %895 = vrot.lane.b32.xlu0 %v863_v28, %s2261_s29  ;;  %899 = vrot.lane.b32.xlu1 %v865_v29, %s2261_s29  ;;  %v2447_v29 = vld [vmem:[%s2836_s5] ss:$0 sm:$0xff] }
  0x28   : > { %2014 = vmatmul.mubr.msk.f32.gmra.mxu0 %vm412_vm0, %v396_v22 }
  0x29   : > { %2016 = vmatprep.mubr.msk.f32.mxu0 %vm412_vm0, %v397_v23 }
  0x2a   : > { %897 = vrot.lane.b32.xlu0 %v864_v30, %s2261_s29  ;;  %901 = vrot.lane.b32.xlu1 %v866_v31, %s2261_s29 }
  0x2c   : > { %2017 = vmatmul.mubr.msk.f32.gmra.mxu0 %vm412_vm0, %v398_v24 }
  0x2d   : > { %2019 = vmatprep.mubr.msk.f32.mxu0 %vm412_vm0, %v399_v25 }
  0x2e   : > { %905 = vrot.lane.b32.xlu1 %v868_v32, %s2261_s29  ;;  %903 = vrot.lane.b32.xlu0 %v867_v33, %s2261_s29 }
  0x30   : > { %2020 = vmatmul.mubr.msk.f32.gmra.mxu0 %vm412_vm0, %v400_v26 }
  0x32   : > { %909 = vrot.lane.b32.xlu1 %v870_v34, %s2261_s29  ;;  %907 = vrot.lane.b32.xlu0 %v869_v35, %s2261_s29 }
  0x36   : > { %913 = vrot.lane.b32.xlu1 %v872_v36, %s2261_s29  ;;  %911 = vrot.lane.b32.xlu0 %v871_v37, %s2261_s29 }
  0x3a   : > { %917 = vrot.lane.b32.xlu1 %v874_v38, %s2261_s29  ;;  %915 = vrot.lane.b32.xlu0 %v873_v39, %s2261_s29 }
  0x3e   : > { %921 = vrot.lane.b32.xlu1 %v876_v40, %s2261_s29  ;;  %919 = vrot.lane.b32.xlu0 %v875_v41, %s2261_s29 }
  0x42   : > { %925 = vrot.lane.b32.xlu1 %v878_v42, %s2261_s29  ;;  %923 = vrot.lane.b32.xlu0 %v877_v43, %s2261_s29 }
  0x98   : > { %v2452_v33 = vpop.permute.xlu1 %899  ;;  %v896_v40 = vpop.permute.xlu0 %895 }
  0xd4   : > { %v2000_v45 = vpop.f32.mrf.mxu0 }
  0xd5   : > { %v533_v46 = vadd.f32 %v2000_v45, %v1818_v44  ;;  %v1040_v45 = vld [vmem:[%s2837_s6 + $0x8] sm:$0xff] }
  0xd6   : > { %v527_v47 = vpop.f32.mrf.mxu0  ;;  %2062 = vmatprep.subr.mxu0 %v1040_v45 }
  0xd7   : > { %v528_v48 = vadd.f32 %v1818_v44, %v527_v47  ;;  %v607_v51 = vmax.f32 %v533_v46, 0.0 }
  0xd8   : > { %v2003_v49 = vpop.f32.mrf.mxu0 }
  0xd9   : > { %v606_v50 = vmax.f32 %v528_v48, 0.0  ;;  %v543_v52 = vadd.f32 %v2003_v49, %v1818_v44  ;;  %v1039_v49 = vld [vmem:[%s2837_s6] sm:$0xff] }
  0xda   : > { %v537_v53 = vpop.f32.mrf.mxu0 }
  0xdb   : > { %v538_v54 = vadd.f32 %v1818_v44, %v537_v53  ;;  %2038 = vmatprep.mubr.msk.f32.mxu0 %vm637_vm1, %v606_v50  ;;  %v609_v57 = vmax.f32 %v543_v52, 0.0  ;;  %v898_v53 = vpop.permute.xlu0 %897 }
  0xdc   : > { %v2006_v55 = vpop.f32.mrf.mxu0  ;;  %2039 = vmatmul.mubr.msk.f32.vlgmr.msra.gmra.mxu0 %vm637_vm1, %v607_v51 }
  0xdd   : > { %v608_v56 = vmax.f32 %v538_v54, 0.0  ;;  %v553_v58 = vadd.f32 %v2006_v55, %v1818_v44  ;;  %2063 = vmatpush3.msra.mxu0 %v1040_v45 }
  0xde   : > { %v547_v59 = vpop.f32.mrf.mxu0  ;;  %2064 = vmatprep.subr.mxu0 %v1039_v49 }
  0xdf   : > { %v548_v60 = vadd.f32 %v1818_v44, %v547_v59  ;;  %2041 = vmatprep.mubr.msk.f32.mxu1 %vm637_vm1, %v608_v56  ;;  %v611_v63 = vmax.f32 %v553_v58, 0.0  ;;  %2065 = vmatpush3.msra.mxu0 %v1039_v49 }
  0xe0   : > { %v2009_v61 = vpop.f32.mrf.mxu0  ;;  %2042 = vmatmul.mubr.msk.f32.vlgmr.msra.gmra.mxu1 %vm637_vm1, %v609_v57 }
  0xe1   : > { %v610_v62 = vmax.f32 %v548_v60, 0.0  ;;  %v563_v0 = vadd.f32 %v2009_v61, %v1818_v44  ;;  %v904_v61 = vpop.permute.xlu0 %903 }
  0xe2   : > { %v557_v1 = vpop.f32.mrf.mxu0 }
  0xe3   : > { %v558_v2 = vadd.f32 %v1818_v44, %v557_v1  ;;  %2044 = vmatprep.mubr.msk.f32.mxu1 %vm637_vm1, %v610_v62  ;;  %v613_v5 = vmax.f32 %v563_v0, 0.0 }
  0xe4   : > { %v2012_v3 = vpop.f32.mrf.mxu0  ;;  %2045 = vmatmul.mubr.msk.f32.gmra.mxu1 %vm637_vm1, %v611_v63 }
  0xe5   : > { %v612_v4 = vmax.f32 %v558_v2, 0.0  ;;  %v573_v6 = vadd.f32 %v2012_v3, %v1818_v44 }
  0xe6   : > { %v567_v7 = vpop.f32.mrf.mxu0 }
  0xe7   : > { %v568_v8 = vadd.f32 %v1818_v44, %v567_v7  ;;  %2047 = vmatprep.mubr.msk.f32.mxu1 %vm637_vm1, %v612_v4  ;;  %v615_v11 = vmax.f32 %v573_v6, 0.0 }
  0xe8   : > { %v2015_v9 = vpop.f32.mrf.mxu0  ;;  %2048 = vmatmul.mubr.msk.f32.gmra.mxu1 %vm637_vm1, %v613_v5 }
  0xe9   : > { %v614_v10 = vmax.f32 %v568_v8, 0.0  ;;  %v583_v12 = vadd.f32 %v2015_v9, %v1818_v44 }
  0xea   : > { %v577_v13 = vpop.f32.mrf.mxu0 }
  0xeb   : > { %v578_v14 = vadd.f32 %v1818_v44, %v577_v13  ;;  %2050 = vmatprep.mubr.msk.f32.mxu1 %vm637_vm1, %v614_v10  ;;  %v617_v17 = vmax.f32 %v583_v12, 0.0  ;;  %v908_v13 = vpop.permute.xlu0 %907 }
  0xec   : > { %v2018_v15 = vpop.f32.mrf.mxu0  ;;  %2051 = vmatmul.mubr.msk.f32.gmra.mxu1 %vm637_vm1, %v615_v11 }
  0xed   : > { %v616_v16 = vmax.f32 %v578_v14, 0.0  ;;  %v593_v18 = vadd.f32 %v2018_v15, %v1818_v44 }
  0xee   : > { %v587_v19 = vpop.f32.mrf.mxu0 }
  0xef   : > { %v588_v20 = vadd.f32 %v1818_v44, %v587_v19  ;;  %2053 = vmatprep.mubr.msk.f32.mxu1 %vm637_vm1, %v616_v16  ;;  %v619_v23 = vmax.f32 %v593_v18, 0.0 }
  0xf0   : > { %v2021_v21 = vpop.f32.mrf.mxu0  ;;  %2054 = vmatmul.mubr.msk.f32.gmra.mxu1 %vm637_vm1, %v617_v17 }
  0xf1   : > { %v618_v22 = vmax.f32 %v588_v20, 0.0  ;;  %v603_v24 = vadd.f32 %v2021_v21, %v1818_v44 }
  0xf2   : > { %v597_v25 = vpop.f32.mrf.mxu0 }
  0xf3   : > { %v598_v26 = vadd.f32 %v1818_v44, %v597_v25  ;;  %2056 = vmatprep.mubr.msk.f32.mxu1 %vm637_vm1, %v618_v22  ;;  %v621_v28 = vmax.f32 %v603_v24, 0.0  ;;  %v902_v44 = vpop.permute.xlu1 %901 }
  0xf4   : > { %2057 = vmatmul.mubr.msk.f32.gmra.mxu1 %vm637_vm1, %v619_v23 }
  0xf5   : > { %v620_v27 = vmax.f32 %v598_v26, 0.0 }
  0xf7   : > { %2059 = vmatprep.mubr.msk.f32.mxu1 %vm637_vm1, %v620_v27  ;;  %v906_v57 = vpop.permute.xlu1 %905 }
  0xf8   : > { %2060 = vmatmul.mubr.msk.f32.gmra.mxu1 %vm637_vm1, %v621_v28 }
  0xfb   : > { %v910_v7 = vpop.permute.xlu1 %909 }
  0xff   : > { %v914_v24 = vpop.permute.xlu1 %913 }
 0x103   : > { %v918_v45 = vpop.permute.xlu1 %917 }
 0x19c   : > { %v2040_v30 = vpop.f32.mrf.mxu0 }
 0x19d   : > { %v2450_v31 = vadd.f32 %v2040_v30, %v2447_v29 }
 0x19e   : > { %v752_v32 = vpop.f32.mrf.mxu0 }
 0x19f   : > { %v833_v34 = vmul.f32 1.442695, %v2450_v31  ;;  %v2456_v35 = vadd.f32 %v2447_v29, %v752_v32  ;;  %v912_v32 = vpop.permute.xlu0 %911 }
 0x1a0   : > { %v2043_v36 = vpop.f32.mrf.mxu1 }
 0x1a1   : > { %2157 = vpow2.f32 %v833_v34  ;;  %v831_v37 = vmul.f32 1.442695, %v2456_v35  ;;  %v2460_v38 = vadd.f32 %v2043_v36, %v2447_v29 }
 0x1a2   : > { %v762_v39 = vpop.f32.mrf.mxu1 }
 0x1a3   : > { %2159 = vpow2.f32 %v831_v37  ;;  %v837_v41 = vmul.f32 1.442695, %v2460_v38  ;;  %v2464_v42 = vadd.f32 %v2447_v29, %v762_v39 }
 0x1a4   : > { %v2046_v43 = vpop.f32.mrf.mxu1 }
 0x1a5   : > { %2161 = vpow2.f32 %v837_v41  ;;  %v835_v46 = vmul.f32 1.442695, %v2464_v42  ;;  %v2471_v47 = vadd.f32 %v2046_v43, %v2447_v29 }
 0x1a6   : > { %v772_v48 = vpop.f32.mrf.mxu1 }
 0x1a7   : > { %2163 = vpow2.f32 %v835_v46  ;;  %v841_v50 = vmul.f32 1.442695, %v2471_v47  ;;  %v2478_v51 = vadd.f32 %v2447_v29, %v772_v48 }
 0x1a8   : > { %v2049_v52 = vpop.f32.mrf.mxu1 }
 0x1a9   : > { %2165 = vpow2.f32 %v841_v50  ;;  %v839_v54 = vmul.f32 1.442695, %v2478_v51  ;;  %v2482_v55 = vadd.f32 %v2049_v52, %v2447_v29  ;;  %v916_v50 = vpop.permute.xlu0 %915 }
 0x1aa   : > { %v782_v56 = vpop.f32.mrf.mxu1 }
 0x1ab   : > { %2167 = vpow2.f32 %v839_v54  ;;  %v845_v58 = vmul.f32 1.442695, %v2482_v55  ;;  %v2486_v59 = vadd.f32 %v2447_v29, %v782_v56  ;;  %v922_v56 = vpop.permute.xlu1 %921 }
 0x1ac   : > { %v2052_v60 = vpop.f32.mrf.mxu1 }
 0x1ad   : > { %2169 = vpow2.f32 %v845_v58  ;;  %v843_v62 = vmul.f32 1.442695, %v2486_v59  ;;  %v2490_v63 = vadd.f32 %v2052_v60, %v2447_v29  ;;  %v920_v60 = vpop.permute.xlu0 %919 }
 0x1ae   : > { %v2492_v0 = vpop.eup %2157  ;;  %v792_v1 = vpop.f32.mrf.mxu1 }
 0x1af   : > { %2171 = vpow2.f32 %v843_v62  ;;  %v849_v2 = vmul.f32 1.442695, %v2490_v63  ;;  %v944_v3 = vmul.f32 %v2492_v0, %v898_v53  ;;  %v2497_v4 = vadd.f32 %v2447_v29, %v792_v1 }
 0x1b0   : > { %v2499_v5 = vpop.eup %2159  ;;  %v2055_v6 = vpop.f32.mrf.mxu1 }
 0x1b1   : > { %v943_v8 = vmul.f32 %v2499_v5, %v896_v40  ;;  %2173 = vpow2.f32 %v849_v2  ;;  %v847_v9 = vmul.f32 1.442695, %v2497_v4  ;;  %v2504_v10 = vadd.f32 %v2055_v6, %v2447_v29  ;;  %977 = vrot.lane.b32.xlu1 %v944_v3, %s2262_s19  ;;  %v926_v3 = vpop.permute.xlu1 %925 }
 0x1b2   : > { %v2507_v11 = vpop.eup %2161  ;;  %v802_v12 = vpop.f32.mrf.mxu1 }
 0x1b3   : > { %2175 = vpow2.f32 %v847_v9  ;;  %v853_v14 = vmul.f32 1.442695, %v2504_v10  ;;  %v946_v15 = vmul.f32 %v2507_v11, %v902_v44  ;;  %v2512_v16 = vadd.f32 %v2447_v29, %v802_v12  ;;  %975 = vrot.lane.b32.xlu0 %v943_v8, %s2262_s19  ;;  %v924_v8 = vpop.permute.xlu0 %923 }
 0x1b4   : > { %v2515_v17 = vpop.eup %2163  ;;  %v2058_v18 = vpop.f32.mrf.mxu1 }
 0x1b5   : > { %v945_v19 = vmul.f32 %v2515_v17, %v2452_v33  ;;  %2177 = vpow2.f32 %v853_v14  ;;  %v851_v20 = vmul.f32 1.442695, %v2512_v16  ;;  %v2521_v21 = vadd.f32 %v2058_v18, %v2447_v29  ;;  %981 = vrot.lane.b32.xlu1 %v946_v15, %s2262_s19  ;;  %v1262_v14 = vld [vmem:[%s2839_s8 + $0x20] sm:$0xff]  ;;  %v1261_v15 = vld [vmem:[%s2839_s8 + $0x18] sm:$0xff] }
 0x1b6   : > { %v2524_v22 = vpop.eup %2165  ;;  %v812_v23 = vpop.f32.mrf.mxu1 }
 0x1b7   : > { %2179 = vpow2.f32 %v851_v20  ;;  %v857_v25 = vmul.f32 1.442695, %v2521_v21  ;;  %v948_v26 = vmul.f32 %v2524_v22, %v906_v57  ;;  %v2529_v27 = vadd.f32 %v2447_v29, %v812_v23  ;;  %979 = vrot.lane.b32.xlu0 %v945_v19, %s2262_s19 }
 0x1b8   : > { %v2532_v28 = vpop.eup %2167  ;;  %v2061_v30 = vpop.f32.mrf.mxu1 }
 0x1b9   : > { %2181 = vpow2.f32 %v857_v25  ;;  %v855_v33 = vmul.f32 1.442695, %v2529_v27  ;;  %v947_v34 = vmul.f32 %v2532_v28, %v904_v61  ;;  %v2537_v36 = vadd.f32 %v2061_v30, %v2447_v29  ;;  %985 = vrot.lane.b32.xlu1 %v948_v26, %s2262_s19 }
 0x1ba   : > { %v2540_v37 = vpop.eup %2169  ;;  %v822_v39 = vpop.f32.mrf.mxu1 }
 0x1bb   : > { %2183 = vpow2.f32 %v855_v33  ;;  %v861_v40 = vmul.f32 1.442695, %v2537_v36  ;;  %v950_v41 = vmul.f32 %v2540_v37, %v910_v7  ;;  %v2545_v43 = vadd.f32 %v2447_v29, %v822_v39  ;;  %983 = vrot.lane.b32.xlu0 %v947_v34, %s2262_s19 }
 0x1bc   : > { %v2172_v44 = vpop.eup %2171 }
 0x1bd   : > { %2185 = vpow2.f32 %v861_v40  ;;  %v859_v46 = vmul.f32 1.442695, %v2545_v43  ;;  %v949_v48 = vmul.f32 %v2172_v44, %v908_v13  ;;  %989 = vrot.lane.b32.xlu1 %v950_v41, %s2262_s19 }
 0x1be   : > { %v2174_v49 = vpop.eup %2173 }
 0x1bf   : > { %2187 = vpow2.f32 %v859_v46  ;;  %v952_v52 = vmul.f32 %v2174_v49, %v914_v24  ;;  %987 = vrot.lane.b32.xlu0 %v949_v48, %s2262_s19 }
 0x1c0   : > { %v2176_v53 = vpop.eup %2175 }
 0x1c1   : > { %v951_v54 = vmul.f32 %v2176_v53, %v912_v32  ;;  %993 = vrot.lane.b32.xlu1 %v952_v52, %s2262_s19 }
 0x1c2   : > { %v2178_v29 = vpop.eup %2177 }
 0x1c3   : > { %v954_v57 = vmul.f32 %v2178_v29, %v918_v45  ;;  %991 = vrot.lane.b32.xlu0 %v951_v54, %s2262_s19 }
 0x1c4   : > { %v2180_v58 = vpop.eup %2179 }
 0x1c5   : > { %v953_v61 = vmul.f32 %v2180_v58, %v916_v50  ;;  %997 = vrot.lane.b32.xlu1 %v954_v57, %s2262_s19 }
 0x1c6   : > { %v2182_v62 = vpop.eup %2181 }
 0x1c7   : > { %v956_v1 = vmul.f32 %v2182_v62, %v922_v56  ;;  %995 = vrot.lane.b32.xlu0 %v953_v61, %s2262_s19 }
 0x1c8   : > { %v2184_v2 = vpop.eup %2183 }
 0x1c9   : > { %v955_v6 = vmul.f32 %v2184_v2, %v920_v60  ;;  %1001 = vrot.lane.b32.xlu1 %v956_v1, %s2262_s19 }
 0x1ca   : > { %v2186_v7 = vpop.eup %2185 }
 0x1cb   : > { %v958_v9 = vmul.f32 %v2186_v7, %v926_v3  ;;  %999 = vrot.lane.b32.xlu0 %v955_v6, %s2262_s19 }
 0x1cc   : > { %v2188_v12 = vpop.eup %2187 }
 0x1cd   : > { %v957_v13 = vmul.f32 %v2188_v12, %v924_v8  ;;  %1005 = vrot.lane.b32.xlu1 %v958_v9, %s2262_s19 }
 0x1cf   : > { %1003 = vrot.lane.b32.xlu0 %v957_v13, %s2262_s19 }
 0x1d1   : > { %1580 = vrot.lane.b32.xlu1 %v2450_v31, %s2263_s20 }
 0x1d3   : > { %1578 = vrot.lane.b32.xlu0 %v2456_v35, %s2263_s20 }
 0x1d5   : > { %1584 = vrot.lane.b32.xlu1 %v2460_v38, %s2263_s20 }
 0x1d7   : > { %1582 = vrot.lane.b32.xlu0 %v2464_v42, %s2263_s20 }
 0x1d9   : > { %1588 = vrot.lane.b32.xlu1 %v2471_v47, %s2263_s20 }
 0x1db   : > { %1586 = vrot.lane.b32.xlu0 %v2478_v51, %s2263_s20 }
 0x1dd   : > { %1592 = vrot.lane.b32.xlu1 %v2482_v55, %s2263_s20 }
 0x1df   : > { %1590 = vrot.lane.b32.xlu0 %v2486_v59, %s2263_s20 }
 0x1e1   : > { %1596 = vrot.lane.b32.xlu1 %v2490_v63, %s2263_s20 }
 0x1e3   : > { %1594 = vrot.lane.b32.xlu0 %v2497_v4, %s2263_s20 }
 0x1e5   : > { %1600 = vrot.lane.b32.xlu1 %v2504_v10, %s2263_s20 }
 0x1e7   : > { %1598 = vrot.lane.b32.xlu0 %v2512_v16, %s2263_s20 }
 0x1e9   : > { %1604 = vrot.lane.b32.xlu1 %v2521_v21, %s2263_s20 }
 0x1eb   : > { %1602 = vrot.lane.b32.xlu0 %v2529_v27, %s2263_s20 }
 0x1ed   : > { %1608 = vrot.lane.b32.xlu1 %v2537_v36, %s2263_s20 }
 0x1ef   : > { %1606 = vrot.lane.b32.xlu0 %v2545_v43, %s2263_s20 }
 0x1f1   : > { %1644 = vrot.lane.b32.xlu1 %v2492_v0, %s2263_s20  ;;  %v1265_v0 = vld [vmem:[%s2839_s8 + $0x38] sm:$0xff] }
 0x1f2   : > { %2090 = vmatprep.subr.mxu1 %v1265_v0 }
 0x1f3   : > { %1642 = vrot.lane.b32.xlu0 %v2499_v5, %s2263_s20  ;;  %v1264_v5 = vld [vmem:[%s2839_s8 + $0x30] sm:$0xff]  ;;  %2091 = vmatpush3.msra.mxu1 %v1265_v0 }
 0x1f4   : > { %2092 = vmatprep.subr.mxu1 %v1264_v5 }
 0x1f5   : > { %1648 = vrot.lane.b32.xlu1 %v2507_v11, %s2263_s20  ;;  %v1263_v11 = vld [vmem:[%s2839_s8 + $0x28] sm:$0xff]  ;;  %2093 = vmatpush3.msra.mxu1 %v1264_v5 }
 0x1f6   : > { %2094 = vmatprep.subr.mxu1 %v1263_v11 }
 0x1f7   : > { %1646 = vrot.lane.b32.xlu0 %v2515_v17, %s2263_s20  ;;  %2095 = vmatpush3.msra.mxu1 %v1263_v11  ;;  %v1260_v17 = vld [vmem:[%s2839_s8 + $0x10] sm:$0xff] }
 0x1f8   : > { %2096 = vmatprep.subr.mxu1 %v1262_v14 }
 0x1f9   : > { %1652 = vrot.lane.b32.xlu1 %v2524_v22, %s2263_s20  ;;  %2097 = vmatpush3.msra.mxu1 %v1262_v14 }
 0x1fa   : > { %2098 = vmatprep.subr.mxu1 %v1261_v15 }
 0x1fb   : > { %1650 = vrot.lane.b32.xlu0 %v2532_v28, %s2263_s20  ;;  %2099 = vmatpush3.msra.mxu1 %v1261_v15 }
 0x1fc   : > { %2100 = vmatprep.subr.mxu1 %v1260_v17 }
 0x1fd   : > { %1656 = vrot.lane.b32.xlu1 %v2540_v37, %s2263_s20  ;;  %2101 = vmatpush3.msra.mxu1 %v1260_v17 }
 0x1ff   : > { %1654 = vrot.lane.b32.xlu0 %v2172_v44, %s2263_s20 }
 0x201   : > { %1660 = vrot.lane.b32.xlu1 %v2174_v49, %s2263_s20 }
 0x203   : > { %1658 = vrot.lane.b32.xlu0 %v2176_v53, %s2263_s20 }
 0x205   : > { %1664 = vrot.lane.b32.xlu1 %v2178_v29, %s2263_s20 }
 0x207   : > { %1662 = vrot.lane.b32.xlu0 %v2180_v58, %s2263_s20 }
 0x209   : > { %1668 = vrot.lane.b32.xlu1 %v2182_v62, %s2263_s20 }
 0x20b   : > { %1666 = vrot.lane.b32.xlu0 %v2184_v2, %s2263_s20 }
 0x20d   : > { %1672 = vrot.lane.b32.xlu1 %v2186_v7, %s2263_s20 }
 0x20f   : > { %1670 = vrot.lane.b32.xlu0 %v2188_v12, %s2263_s20 }
 0x223   : > { %v978_v18 = vpop.permute.xlu1 %977 }
 0x224   : > { %v1024_v22 = vadd.f32 %v978_v18, %v2450_v31 }
 0x225   : > { %v976_v19 = vpop.permute.xlu0 %975 }
 0x226   : > { %v1023_v20 = vadd.f32 %v976_v19, %v2456_v35 }
 0x227   : > { %v982_v23 = vpop.permute.xlu1 %981 }
 0x228   : > { %2066 = vmatprep.mubr.msk.f32.mxu0 %vm1048_vm2, %v1023_v20  ;;  %v1026_v26 = vadd.f32 %v982_v23, %v2460_v38 }
 0x229   : > { %2067 = vmatmul.mubr.msk.f32.vlgmr.msra.gmra.mxu0 %vm1048_vm2, %v1024_v22  ;;  %v980_v24 = vpop.permute.xlu0 %979 }
 0x22a   : > { %v1025_v25 = vadd.f32 %v980_v24, %v2464_v42 }
 0x22b   : > { %v986_v28 = vpop.permute.xlu1 %985 }
 0x22c   : > { %2069 = vmatprep.mubr.msk.f32.mxu0 %vm1048_vm2, %v1025_v25  ;;  %v1028_v31 = vadd.f32 %v986_v28, %v2471_v47 }
 0x22d   : > { %2070 = vmatmul.mubr.msk.f32.gmra.mxu0 %vm1048_vm2, %v1026_v26  ;;  %v984_v30 = vpop.permute.xlu0 %983 }
 0x22e   : > { %v1027_v35 = vadd.f32 %v984_v30, %v2478_v51 }
 0x22f   : > { %v990_v32 = vpop.permute.xlu1 %989 }
 0x230   : > { %2072 = vmatprep.mubr.msk.f32.mxu0 %vm1048_vm2, %v1027_v35  ;;  %v1030_v38 = vadd.f32 %v990_v32, %v2482_v55 }
 0x231   : > { %2073 = vmatmul.mubr.msk.f32.gmra.mxu0 %vm1048_vm2, %v1028_v31  ;;  %v988_v33 = vpop.permute.xlu0 %987 }
 0x232   : > { %v1029_v42 = vadd.f32 %v988_v33, %v2486_v59 }
 0x233   : > { %v994_v34 = vpop.permute.xlu1 %993 }
 0x234   : > { %2075 = vmatprep.mubr.msk.f32.mxu0 %vm1048_vm2, %v1029_v42  ;;  %v1032_v47 = vadd.f32 %v994_v34, %v2490_v63 }
 0x235   : > { %2076 = vmatmul.mubr.msk.f32.gmra.mxu0 %vm1048_vm2, %v1030_v38  ;;  %v992_v37 = vpop.permute.xlu0 %991 }
 0x236   : > { %v1031_v51 = vadd.f32 %v992_v37, %v2497_v4 }
 0x237   : > { %v998_v39 = vpop.permute.xlu1 %997 }
 0x238   : > { %2078 = vmatprep.mubr.msk.f32.mxu0 %vm1048_vm2, %v1031_v51  ;;  %v1034_v55 = vadd.f32 %v998_v39, %v2504_v10 }
 0x239   : > { %2079 = vmatmul.mubr.msk.f32.gmra.mxu0 %vm1048_vm2, %v1032_v47  ;;  %v996_v40 = vpop.permute.xlu0 %995 }
 0x23a   : > { %v1033_v59 = vadd.f32 %v996_v40, %v2512_v16 }
 0x23b   : > { %v1002_v41 = vpop.permute.xlu1 %1001 }
 0x23c   : > { %2081 = vmatprep.mubr.msk.f32.mxu0 %vm1048_vm2, %v1033_v59  ;;  %v1036_v63 = vadd.f32 %v1002_v41, %v2521_v21  ;;  %v1258_v21 = vld [vmem:[%s2839_s8] sm:$0xff] }
 0x23d   : > { %2082 = vmatmul.mubr.msk.f32.gmra.mxu0 %vm1048_vm2, %v1034_v55  ;;  %v1000_v44 = vpop.permute.xlu0 %999 }
 0x23e   : > { %v1035_v4 = vadd.f32 %v1000_v44, %v2529_v27  ;;  %v1259_v27 = vld [vmem:[%s2839_s8 + $0x8] sm:$0xff] }
 0x23f   : > { %v1006_v45 = vpop.permute.xlu1 %1005  ;;  %2102 = vmatprep.subr.mxu1 %v1259_v27 }
 0x240   : > { %2084 = vmatprep.mubr.msk.f32.mxu0 %vm1048_vm2, %v1035_v4  ;;  %v1038_v10 = vadd.f32 %v1006_v45, %v2537_v36  ;;  %2103 = vmatpush3.msra.mxu1 %v1259_v27  ;;  %v1852_v36 = vld [vmem:[%s2838_s7] ss:$0 sm:$0xff] }
 0x241   : > { %2085 = vmatmul.mubr.msk.f32.gmra.mxu0 %vm1048_vm2, %v1036_v63  ;;  %v1004_v46 = vpop.permute.xlu0 %1003  ;;  %2104 = vmatprep.subr.mxu1 %v1258_v21  ;;  %v2710_v45 = vld [vmem:[%s2840_s9] ss:$0 sm:$0xff] }
 0x242   : > { %v1037_v16 = vadd.f32 %v1004_v46, %v2545_v43  ;;  %2105 = vmatpush3.msra.mxu1 %v1258_v21 }
 0x243   : > { %v2689_v47 = vpop.permute.xlu1 %1580 }
 0x244   : > { %2087 = vmatprep.mubr.msk.f32.mxu0 %vm1048_vm2, %v1037_v16 }
 0x245   : > { %2088 = vmatmul.mubr.msk.f32.gmra.mxu0 %vm1048_vm2, %v1038_v10  ;;  %v2691_v39 = vpop.permute.xlu0 %1578 }
 0x247   : > { %v2693_v40 = vpop.permute.xlu1 %1584 }
 0x249   : > { %v2695_v59 = vpop.permute.xlu0 %1582 }
 0x24b   : > { %v2697_v55 = vpop.permute.xlu1 %1588 }
 0x24d   : > { %v2699_v41 = vpop.permute.xlu0 %1586 }
 0x24f   : > { %v2701_v44 = vpop.permute.xlu1 %1592 }
 0x251   : > { %v2703_v4 = vpop.permute.xlu0 %1590 }
 0x253   : > { %v2705_v63 = vpop.permute.xlu1 %1596 }
 0x255   : > { %v2712_v46 = vpop.permute.xlu0 %1594 }
 0x2e9   : > { %v2068_v43 = vpop.f32.mrf.mxu0 }
 0x2ea   : > { %v1169_v48 = vadd.f32 %v2068_v43, %v1852_v36  ;;  %v2716_v43 = vpop.permute.xlu1 %1600 }
 0x2eb   : > { %v1163_v49 = vpop.f32.mrf.mxu0 }
 0x2ec   : > { %v1164_v50 = vadd.f32 %v1852_v36, %v1163_v49  ;;  %v1243_v54 = vmax.f32 %v1169_v48, 0.0 }
 0x2ed   : > { %v2071_v52 = vpop.f32.mrf.mxu0 }
 0x2ee   : > { %v1242_v53 = vmax.f32 %v1164_v50, 0.0  ;;  %v1179_v29 = vadd.f32 %v2071_v52, %v1852_v36  ;;  %v2719_v52 = vpop.permute.xlu0 %1598 }
 0x2ef   : > { %v1173_v56 = vpop.f32.mrf.mxu0 }
 0x2f0   : > { %v1174_v57 = vadd.f32 %v1852_v36, %v1173_v56  ;;  %2106 = vmatprep.mubr.msk.f32.mxu1 %vm637_vm1, %v1242_v53  ;;  %v1245_v61 = vmax.f32 %v1179_v29, 0.0 }
 0x2f1   : > { %v2074_v58 = vpop.f32.mrf.mxu0  ;;  %2107 = vmatmul.mubr.msk.f32.vlgmr.msra.gmra.mxu1 %vm637_vm1, %v1243_v54 }
 0x2f2   : > { %v1244_v60 = vmax.f32 %v1174_v57, 0.0  ;;  %v1189_v62 = vadd.f32 %v2074_v58, %v1852_v36 }
 0x2f3   : > { %v1183_v1 = vpop.f32.mrf.mxu0 }
 0x2f4   : > { %v1184_v2 = vadd.f32 %v1852_v36, %v1183_v1  ;;  %2109 = vmatprep.mubr.msk.f32.mxu1 %vm637_vm1, %v1244_v60  ;;  %v1247_v7 = vmax.f32 %v1189_v62, 0.0  ;;  %v2723_v60 = vpop.permute.xlu1 %1604 }
 0x2f5   : > { %v2077_v3 = vpop.f32.mrf.mxu0  ;;  %2110 = vmatmul.mubr.msk.f32.gmra.mxu1 %vm637_vm1, %v1245_v61 }
 0x2f6   : > { %v1246_v6 = vmax.f32 %v1184_v2, 0.0  ;;  %v1199_v8 = vadd.f32 %v2077_v3, %v1852_v36  ;;  %v2726_v2 = vpop.permute.xlu0 %1602 }
 0x2f7   : > { %v1193_v9 = vpop.f32.mrf.mxu0 }
 0x2f8   : > { %v1194_v12 = vadd.f32 %v1852_v36, %v1193_v9  ;;  %2112 = vmatprep.mubr.msk.f32.mxu1 %vm637_vm1, %v1246_v6  ;;  %v1249_v5 = vmax.f32 %v1199_v8, 0.0 }
 0x2f9   : > { %v2080_v13 = vpop.f32.mrf.mxu0  ;;  %2113 = vmatmul.mubr.msk.f32.gmra.mxu1 %vm637_vm1, %v1247_v7 }
 0x2fa   : > { %v1248_v0 = vmax.f32 %v1194_v12, 0.0  ;;  %v1209_v11 = vadd.f32 %v2080_v13, %v1852_v36  ;;  %v2730_v13 = vpop.permute.xlu1 %1608 }
 0x2fb   : > { %v1203_v14 = vpop.f32.mrf.mxu0 }
 0x2fc   : > { %v1204_v15 = vadd.f32 %v1852_v36, %v1203_v14  ;;  %2115 = vmatprep.mubr.msk.f32.mxu1 %vm637_vm1, %v1248_v0  ;;  %v1251_v19 = vmax.f32 %v1209_v11, 0.0 }
 0x2fd   : > { %v2083_v17 = vpop.f32.mrf.mxu0  ;;  %2116 = vmatmul.mubr.msk.f32.gmra.mxu1 %vm637_vm1, %v1249_v5 }
 0x2fe   : > { %v1250_v18 = vmax.f32 %v1204_v15, 0.0  ;;  %v1219_v20 = vadd.f32 %v2083_v17, %v1852_v36  ;;  %v2733_v15 = vpop.permute.xlu0 %1606 }
 0x2ff   : > { %v1213_v22 = vpop.f32.mrf.mxu0 }
 0x300   : > { %v1214_v23 = vadd.f32 %v1852_v36, %v1213_v22  ;;  %2118 = vmatprep.mubr.msk.f32.mxu1 %vm637_vm1, %v1250_v18  ;;  %v1253_v26 = vmax.f32 %v1219_v20, 0.0 }
 0x301   : > { %v2086_v24 = vpop.f32.mrf.mxu0  ;;  %2119 = vmatmul.mubr.msk.f32.gmra.mxu1 %vm637_vm1, %v1251_v19 }
 0x302   : > { %v1252_v25 = vmax.f32 %v1214_v23, 0.0  ;;  %v1229_v28 = vadd.f32 %v2086_v24, %v1852_v36 }
 0x303   : > { %v1223_v30 = vpop.f32.mrf.mxu0 }
 0x304   : > { %v1224_v35 = vadd.f32 %v1852_v36, %v1223_v30  ;;  %2121 = vmatprep.mubr.msk.f32.mxu1 %vm637_vm1, %v1252_v25  ;;  %v1255_v33 = vmax.f32 %v1229_v28, 0.0  ;;  %v1645_v30 = vpop.permute.xlu1 %1644 }
 0x305   : > { %v2089_v31 = vpop.f32.mrf.mxu0  ;;  %2122 = vmatmul.mubr.msk.f32.gmra.mxu1 %vm637_vm1, %v1253_v26 }
 0x306   : > { %v1254_v32 = vmax.f32 %v1224_v35, 0.0  ;;  %v1239_v42 = vadd.f32 %v2089_v31, %v1852_v36 }
 0x307   : > { %v1233_v38 = vpop.f32.mrf.mxu0 }
 0x308   : > { %v1234_v34 = vadd.f32 %v1852_v36, %v1233_v38  ;;  %2124 = vmatprep.mubr.msk.f32.mxu1 %vm637_vm1, %v1254_v32  ;;  %v1257_v51 = vmax.f32 %v1239_v42, 0.0  ;;  %v1643_v38 = vpop.permute.xlu0 %1642 }
 0x309   : > { %2125 = vmatmul.mubr.msk.f32.gmra.mxu1 %vm637_vm1, %v1255_v33 }
 0x30a   : > { %v1256_v37 = vmax.f32 %v1234_v34, 0.0 }
 0x30c   : > { %2127 = vmatprep.mubr.msk.f32.mxu1 %vm637_vm1, %v1256_v37 }
 0x30d   : > { %2128 = vmatmul.mubr.msk.f32.gmra.mxu1 %vm637_vm1, %v1257_v51 }
 0x3b1   : > { %v2108_v16 = vpop.f32.mrf.mxu1 }
 0x3b2   : > { %v1393_v10 = vadd.f32 %v2108_v16, %v2710_v45 }
 0x3b3   : > { %v1387_v27 = vpop.f32.mrf.mxu1 }
 0x3b4   : > { %v1887_v21 = vmul.f32 -1.442695, %v1393_v10  ;;  %v1388_v36 = vadd.f32 %v2710_v45, %v1387_v27 }
 0x3b5   : > { %v2111_v48 = vpop.f32.mrf.mxu1 }
 0x3b6   : > { %2189 = vpow2.f32 %v1887_v21  ;;  %v1886_v49 = vmul.f32 -1.442695, %v1388_v36  ;;  %v1403_v50 = vadd.f32 %v2111_v48, %v2710_v45 }
 0x3b7   : > { %v1397_v53 = vpop.f32.mrf.mxu1 }
 0x3b8   : > { %2191 = vpow2.f32 %v1886_v49  ;;  %v1889_v54 = vmul.f32 -1.442695, %v1403_v50  ;;  %v1398_v29 = vadd.f32 %v2710_v45, %v1397_v53  ;;  %v1649_v50 = vpop.permute.xlu1 %1648 }
 0x3b9   : > { %v2114_v56 = vpop.f32.mrf.mxu1 }
 0x3ba   : > { %2193 = vpow2.f32 %v1889_v54  ;;  %v1888_v57 = vmul.f32 -1.442695, %v1398_v29  ;;  %v1413_v58 = vadd.f32 %v2114_v56, %v2710_v45 }
 0x3bb   : > { %v1407_v61 = vpop.f32.mrf.mxu1 }
 0x3bc   : > { %2195 = vpow2.f32 %v1888_v57  ;;  %v1891_v62 = vmul.f32 -1.442695, %v1413_v58  ;;  %v1408_v1 = vadd.f32 %v2710_v45, %v1407_v61  ;;  %v1647_v58 = vpop.permute.xlu0 %1646 }
 0x3bd   : > { %v2117_v3 = vpop.f32.mrf.mxu1 }
 0x3be   : > { %2197 = vpow2.f32 %v1891_v62  ;;  %v1890_v6 = vmul.f32 -1.442695, %v1408_v1  ;;  %v1423_v7 = vadd.f32 %v2117_v3, %v2710_v45 }
 0x3bf   : > { %v1417_v8 = vpop.f32.mrf.mxu1 }
 0x3c0   : > { %2199 = vpow2.f32 %v1890_v6  ;;  %v1893_v9 = vmul.f32 -1.442695, %v1423_v7  ;;  %v1418_v12 = vadd.f32 %v2710_v45, %v1417_v8 }
 0x3c1   : > { %v2120_v0 = vpop.f32.mrf.mxu1 }
 0x3c2   : > { %2201 = vpow2.f32 %v1893_v9  ;;  %v1892_v5 = vmul.f32 -1.442695, %v1418_v12  ;;  %v1433_v11 = vadd.f32 %v2120_v0, %v2710_v45  ;;  %v1653_v12 = vpop.permute.xlu1 %1652 }
 0x3c3   : > { %v2190_v14 = vpop.eup %2189  ;;  %v1427_v17 = vpop.f32.mrf.mxu1 }
 0x3c4   : > { %v1515_v18 = vadd.f32 1.0, %v2190_v14  ;;  %2203 = vpow2.f32 %v1892_v5  ;;  %v1895_v19 = vmul.f32 -1.442695, %v1433_v11  ;;  %v1428_v20 = vadd.f32 %v2710_v45, %v1427_v17  ;;  %v1651_v11 = vpop.permute.xlu0 %1650 }
 0x3c5   : > { %v2192_v22 = vpop.eup %2191  ;;  %v2123_v23 = vpop.f32.mrf.mxu1 }
 0x3c6   : > { %2205 = vrcp.f32 %v1515_v18  ;;  %v1514_v24 = vadd.f32 1.0, %v2192_v22  ;;  %v1894_v25 = vmul.f32 -1.442695, %v1428_v20  ;;  %v1443_v26 = vadd.f32 %v2123_v23, %v2710_v45 }
 0x3c7   : > { %v2194_v28 = vpop.eup %2193  ;;  %2207 = vpow2.f32 %v1895_v19  ;;  %v1437_v35 = vpop.f32.mrf.mxu1 }
 0x3c8   : > { %2209 = vrcp.f32 %v1514_v24  ;;  %v1517_v31 = vadd.f32 1.0, %v2194_v28  ;;  %v1897_v32 = vmul.f32 -1.442695, %v1443_v26  ;;  %v1438_v33 = vadd.f32 %v2710_v45, %v1437_v35  ;;  %v1657_v26 = vpop.permute.xlu1 %1656 }
 0x3c9   : > { %v2196_v42 = vpop.eup %2195  ;;  %2211 = vpow2.f32 %v1894_v25  ;;  %v2126_v34 = vpop.f32.mrf.mxu1 }
 0x3ca   : > { %2213 = vrcp.f32 %v1517_v31  ;;  %v1516_v37 = vadd.f32 1.0, %v2196_v42  ;;  %v1896_v51 = vmul.f32 -1.442695, %v1438_v33  ;;  %v1453_v16 = vadd.f32 %v2126_v34, %v2710_v45 }
 0x3cb   : > { %v2198_v10 = vpop.eup %2197  ;;  %2215 = vpow2.f32 %v1897_v32  ;;  %v1447_v27 = vpop.f32.mrf.mxu1 }
 0x3cc   : > { %2217 = vrcp.f32 %v1516_v37  ;;  %v1519_v21 = vadd.f32 1.0, %v2198_v10  ;;  %v1899_v36 = vmul.f32 -1.442695, %v1453_v16  ;;  %v1448_v48 = vadd.f32 %v2710_v45, %v1447_v27  ;;  %v1655_v32 = vpop.permute.xlu0 %1654  ;;  %v1661_v27 = vpop.permute.xlu1 %1660 }
 0x3cd   : > { %v2200_v49 = vpop.eup %2199  ;;  %2219 = vpow2.f32 %v1896_v51  ;;  %v2129_v53 = vpop.f32.mrf.mxu1 }
 0x3ce   : > { %2221 = vrcp.f32 %v1519_v21  ;;  %v1518_v54 = vadd.f32 1.0, %v2200_v49  ;;  %v1898_v29 = vmul.f32 -1.442695, %v1448_v48  ;;  %v1463_v56 = vadd.f32 %v2129_v53, %v2710_v45 }
 0x3cf   : > { %v2202_v57 = vpop.eup %2201  ;;  %2223 = vpow2.f32 %v1899_v36  ;;  %v1457_v61 = vpop.f32.mrf.mxu1 }
 0x3d0   : > { %2225 = vrcp.f32 %v1518_v54  ;;  %v1521_v62 = vadd.f32 1.0, %v2202_v57  ;;  %v1901_v1 = vmul.f32 -1.442695, %v1463_v56  ;;  %v1458_v3 = vadd.f32 %v2710_v45, %v1457_v61 }
 0x3d1   : > { %v2204_v6 = vpop.eup %2203  ;;  %2227 = vpow2.f32 %v1898_v29 }
 0x3d2   : > { %2229 = vrcp.f32 %v1521_v62  ;;  %v1520_v7 = vadd.f32 1.0, %v2204_v6  ;;  %v1900_v8 = vmul.f32 -1.442695, %v1458_v3 }
 0x3d3   : > { %v2206_v9 = vpop.eup %2205  ;;  %2231 = vpow2.f32 %v1901_v1 }
 0x3d4   : > { %v2208_v0 = vpop.eup %2207  ;;  %v1691_v45 = vsel %vm412_vm0, %v2206_v9, %v2689_v47  ;;  %2233 = vrcp.f32 %v1520_v7 }
 0x3d5   : > { %v2210_v5 = vpop.eup %2209  ;;  %v1708_v14 = vsel %vm1706_vm3, %v1691_v45, %v1645_v30  ;;  %v1523_v17 = vadd.f32 1.0, %v2208_v0  ;;  %2235 = vpow2.f32 %v1900_v8 }
 0x3d6   : > { %v2212_v18 = vpop.eup %2211  ;;  %1724 = vst.msk [vmem:[%s2746_s25 + $0x8] sm:$0xff] %vm637_vm1, %v1708_v14  ;;  %v1690_v19 = vsel %vm412_vm0, %v2210_v5, %v2691_v39 }
 0x3d7   : > { %v2214_v20 = vpop.eup %2213  ;;  %v1707_v22 = vsel %vm1706_vm3, %v1690_v19, %v1643_v38  ;;  %2237 = vrcp.f32 %v1523_v17  ;;  %v1522_v23 = vadd.f32 1.0, %v2212_v18 }
 0x3d8   : > { %v2216_v47 = vpop.eup %2215  ;;  %1723 = vst.msk [vmem:[%s2746_s25] sm:$0xff] %vm637_vm1, %v1707_v22  ;;  %v1693_v24 = vsel %vm412_vm0, %v2214_v20, %v2693_v40 }
 0x3d9   : > { %v2218_v25 = vpop.eup %2217  ;;  %v1710_v28 = vsel %vm1706_vm3, %v1693_v24, %v1649_v50  ;;  %2239 = vrcp.f32 %v1522_v23  ;;  %v1525_v30 = vadd.f32 1.0, %v2216_v47  ;;  %v1659_v50 = vpop.permute.xlu0 %1658 }
 0x3da   : > { %v2220_v35 = vpop.eup %2219  ;;  %1726 = vst.msk [vmem:[%s2746_s25 + $0x18] sm:$0xff] %vm637_vm1, %v1710_v28  ;;  %v1692_v39 = vsel %vm412_vm0, %v2218_v25, %v2695_v59 }
 0x3db   : > { %v2222_v31 = vpop.eup %2221  ;;  %v1709_v33 = vsel %vm1706_vm3, %v1692_v39, %v1647_v58  ;;  %2241 = vrcp.f32 %v1525_v30  ;;  %v1524_v42 = vadd.f32 1.0, %v2220_v35 }
 0x3dc   : > { %v2224_v40 = vpop.eup %2223  ;;  %1725 = vst.msk [vmem:[%s2746_s25 + $0x10] sm:$0xff] %vm637_vm1, %v1709_v33  ;;  %v1695_v38 = vsel %vm412_vm0, %v2222_v31, %v2697_v55 }
 0x3dd   : > { %v2226_v34 = vpop.eup %2225  ;;  %v1712_v37 = vsel %vm1706_vm3, %v1695_v38, %v1653_v12  ;;  %2243 = vrcp.f32 %v1524_v42  ;;  %v1527_v51 = vadd.f32 1.0, %v2224_v40  ;;  %v1663_v3 = vpop.permute.xlu0 %1662 }
 0x3de   : > { %v2228_v16 = vpop.eup %2227  ;;  %1728 = vst.msk [vmem:[%s2746_s25 + $0x28] sm:$0xff] %vm637_vm1, %v1712_v37  ;;  %v1694_v59 = vsel %vm412_vm0, %v2226_v34, %v2699_v41 }
 0x3df   : > { %v2230_v10 = vpop.eup %2229  ;;  %v1711_v21 = vsel %vm1706_vm3, %v1694_v59, %v1651_v11  ;;  %2245 = vrcp.f32 %v1527_v51  ;;  %v1526_v36 = vadd.f32 1.0, %v2228_v16 }
 0x3e0   : > { %v2232_v55 = vpop.eup %2231  ;;  %1727 = vst.msk [vmem:[%s2746_s25 + $0x20] sm:$0xff] %vm637_vm1, %v1711_v21  ;;  %v1697_v48 = vsel %vm412_vm0, %v2230_v10, %v2701_v44  ;;  %v1665_v44 = vpop.permute.xlu1 %1664 }
 0x3e1   : > { %v2234_v49 = vpop.eup %2233  ;;  %v1714_v53 = vsel %vm1706_vm3, %v1697_v48, %v1657_v26  ;;  %2247 = vrcp.f32 %v1526_v36  ;;  %v1529_v41 = vadd.f32 1.0, %v2232_v55  ;;  %v1667_v5 = vpop.permute.xlu0 %1666 }
 0x3e2   : > { %v2236_v54 = vpop.eup %2235  ;;  %1730 = vst.msk [vmem:[%s2746_s25 + $0x38] sm:$0xff] %vm637_vm1, %v1714_v53  ;;  %v1696_v29 = vsel %vm412_vm0, %v2234_v49, %v2703_v4 }
 0x3e3   : > { %v1713_v56 = vsel %vm1706_vm3, %v1696_v29, %v1655_v32  ;;  %2249 = vrcp.f32 %v1529_v41  ;;  %v1528_v57 = vadd.f32 1.0, %v2236_v54 }
 0x3e4   : > { %v2238_v58 = vpop.eup %2237  ;;  %1729 = vst.msk [vmem:[%s2746_s25 + $0x30] sm:$0xff] %vm637_vm1, %v1713_v56  ;;  %v1669_v12 = vpop.permute.xlu1 %1668 }
 0x3e5   : > { %v1699_v61 = vsel %vm412_vm0, %v2238_v58, %v2705_v63  ;;  %2251 = vrcp.f32 %v1528_v57  ;;  %v1671_v23 = vpop.permute.xlu0 %1670 }
 0x3e6   : > { %v2240_v62 = vpop.eup %2239  ;;  %v1716_v1 = vsel %vm1706_vm3, %v1699_v61, %v1661_v27 }
 0x3e7   : > { %1732 = vst.msk [vmem:[%s2746_s25 + $0x48] sm:$0xff] %vm637_vm1, %v1716_v1  ;;  %v1698_v4 = vsel %vm412_vm0, %v2240_v62, %v2712_v46 }
 0x3e8   : > { %v2242_v6 = vpop.eup %2241  ;;  %v1715_v7 = vsel %vm1706_vm3, %v1698_v4, %v1659_v50  ;;  %v1673_v19 = vpop.permute.xlu1 %1672 }
 0x3e9   : > { %1731 = vst.msk [vmem:[%s2746_s25 + $0x40] sm:$0xff] %vm637_vm1, %v1715_v7  ;;  %v1701_v63 = vsel %vm412_vm0, %v2242_v6, %v2716_v43 }
 0x3ea   : > { %v2244_v8 = vpop.eup %2243  ;;  %v1718_v9 = vsel %vm1706_vm3, %v1701_v63, %v1665_v44 }
 0x3eb   : > { %1734 = vst.msk [vmem:[%s2746_s25 + $0x58] sm:$0xff] %vm637_vm1, %v1718_v9  ;;  %v1700_v0 = vsel %vm412_vm0, %v2244_v8, %v2719_v52 }
 0x3ec   : > { %v2246_v46 = vpop.eup %2245  ;;  %v1717_v45 = vsel %vm1706_vm3, %v1700_v0, %v1663_v3 }
 0x3ed   : > { %1733 = vst.msk [vmem:[%s2746_s25 + $0x50] sm:$0xff] %vm637_vm1, %v1717_v45  ;;  %v1703_v43 = vsel %vm412_vm0, %v2246_v46, %v2723_v60 }
 0x3ee   : > { %v2248_v11 = vpop.eup %2247  ;;  %v1720_v14 = vsel %vm1706_vm3, %v1703_v43, %v1669_v12 }
 0x3ef   : > { %1736 = vst.msk [vmem:[%s2746_s25 + $0x68] sm:$0xff] %vm637_vm1, %v1720_v14  ;;  %v1702_v17 = vsel %vm412_vm0, %v2248_v11, %v2726_v2 }
 0x3f0   : > { %v2250_v52 = vpop.eup %2249  ;;  %v1719_v18 = vsel %vm1706_vm3, %v1702_v17, %v1667_v5 }
 0x3f1   : > { %1735 = vst.msk [vmem:[%s2746_s25 + $0x60] sm:$0xff] %vm637_vm1, %v1719_v18  ;;  %v1705_v20 = vsel %vm412_vm0, %v2250_v52, %v2730_v13 }
 0x3f2   : > { %v2252_v22 = vpop.eup %2251  ;;  %v1722_v60 = vsel %vm1706_vm3, %v1705_v20, %v1673_v19 }
 0x3f3   : > { %1738 = vst.msk [vmem:[%s2746_s25 + $0x78] sm:$0xff] %vm637_vm1, %v1722_v60  ;;  %v1704_v47 = vsel %vm412_vm0, %v2252_v22, %v2733_v15 }
 0x3f4   : > { %v1721_v2 = vsel %vm1706_vm3, %v1704_v47, %v1671_v23 }
 0x3f5   : > { %1737 = vst.msk [vmem:[%s2746_s25 + $0x70] sm:$0xff] %vm637_vm1, %v1721_v2 }
 0x3f6 PF: > { %s20_s13 = sadd.s32 1, %s2259_s13  }
 0x3f7   : > { %p17_p4 = scmp.ge.s32.totalorder %s20_s13, 4  }
 0x3f9   :  { %19 = sbr.rel (!%p17_p4) target bundleno = 1 (0x1), region = 93 }

</bundles_post_ra>
